<compile_context>
chip_gen: v5e
topology: v5e:2x2
jax: 0.10.0
libtpu: 0.0.40
codegen_flags: <defaults>
</compile_context>

<pallas_src>
import jax
import jax.numpy as jnp
import numpy as np
from jax import lax
from jax.experimental import pallas as pl
from jax.experimental.pallas import tpu as pltpu


# ----------------------------- Pallas kernels --------------------------------

def _rope_dense_kernel(pos_ref, inv_ref, cos_ref, sin_ref):
    """Lane-dense path: output tile is the flattened (rows, 128) view of (S, dim).

    pos_ref: (1, rows_blk, r) f32   positions, r = 128 // dim per 128-lane row
    inv_ref: (1, 128)        f32   inv_freq duplicated to dim and tiled r times
    cos/sin_ref: (1, rows_blk, 128) out_dtype
    """
    pos = pos_ref[0]                                   # (rows, r)
    inv = inv_ref[...]                                 # (1, 128)
    rows, r = pos.shape
    dim = 128 // r

    # Expand positions along lanes: pos_dense[row, l] = pos[row, l // dim].
    pos_dense = jnp.broadcast_to(pos[:, 0:1], (rows, 128))
    if r > 1:
        lane = lax.broadcasted_iota(jnp.int32, (rows, 128), 1)
        for sub in range(1, r):                        # static unroll, VPU slack
            pos_dense = jnp.where(lane >= sub * dim, pos[:, sub:sub + 1], pos_dense)

    freqs = pos_dense * inv                            # (rows, 128) f32, lane-dense
    cos_ref[0] = jnp.cos(freqs).astype(cos_ref.dtype)
    sin_ref[0] = jnp.sin(freqs).astype(sin_ref.dtype)


def _rope_general_kernel(pos_ref, inv_ref, cos_ref, sin_ref):
    """General path (any dim): straightforward broadcast-multiply + cos/sin."""
    pos = pos_ref[0]                                   # (tile_s, 1) f32
    inv = inv_ref[...]                                 # (1, dim)    f32 (already duplicated)
    freqs = pos * inv                                  # (tile_s, dim)
    cos_ref[0] = jnp.cos(freqs).astype(cos_ref.dtype)
    sin_ref[0] = jnp.sin(freqs).astype(sin_ref.dtype)


# ------------------------------ tiling helpers --------------------------------

def _sublane_multiple(dtype):
    """Rows per packed vreg for the output dtype (8 f32, 16 bf16, 32 int8)."""
    itemsize = jnp.dtype(dtype).itemsize
    if itemsize >= 4:
        return 8
    return 8 * (4 // itemsize)


def _pick_tile(n, sub_mult, max_tile, want_steps):
    """Largest t with n % t == 0, t % sub_mult == 0, t <= max_tile; prefer
    n // t >= want_steps (keeps both v7x TensorCores busy for B == 1)."""
    if n % sub_mult != 0:
        return n                                       # full-extent block (always legal)
    hi = min(n, max_tile)
    cands = [t for t in range(sub_mult, hi + 1, sub_mult) if n % t == 0]
    if not cands:
        return n
    good = [t for t in cands if n // t >= want_steps]
    return max(good) if good else max(cands)


# -------------------------------- wrapper -------------------------------------

def phi3_rotary_embedding(x, position_ids, *, dim, base=10000.0, max_tile=2048):
    """Pallas equivalent of Phi3RotaryEmbedding.forward.

    x:            any array — only its dtype is used (as in the PyTorch module).
    position_ids: (B, S) integer positions.
    Returns (cos, sin), each of shape (B, S, dim) in x.dtype.
    """
    assert dim % 2 == 0, "RoPE dim must be even"
    B, S = position_ids.shape
    out_dtype = x.dtype

    inv_freq = 1.0 / (base ** (jnp.arange(0, dim, 2, dtype=jnp.float32) / dim))
    sub_mult = _sublane_multiple(out_dtype)
    want_steps = 2 if B == 1 else 1
    dim_sem = pltpu.CompilerParams(dimension_semantics=("parallel", "parallel"))

    dense_ok = (dim <= 128) and (128 % dim == 0) and (S % (128 // dim) == 0)

    if dense_ok:
        # ---- lane-dense fast path: flatten (S, dim) -> (n_rows, 128) ----
        r = 128 // dim
        n_rows = S // r
        inv_tiled = jnp.tile(jnp.concatenate([inv_freq, inv_freq]), r).reshape(1, 128)
        pos = position_ids.astype(jnp.float32).reshape(B, n_rows, r)

        rows_blk = _pick_tile(n_rows, sub_mult, max_tile, want_steps)
        grid = (B, n_rows // rows_blk)

        cos, sin = pl.pallas_call(
            _rope_dense_kernel,
            out_shape=(jax.ShapeDtypeStruct((B, n_rows, 128), out_dtype),
                       jax.ShapeDtypeStruct((B, n_rows, 128), out_dtype)),
            grid=grid,
            in_specs=[
                pl.BlockSpec((1, rows_blk, r), lambda b, t: (b, t, 0)),
                pl.BlockSpec((1, 128), lambda b, t: (0, 0)),
            ],
            out_specs=(
                pl.BlockSpec((1, rows_blk, 128), lambda b, t: (b, t, 0)),
                pl.BlockSpec((1, rows_blk, 128), lambda b, t: (b, t, 0)),
            ),
            compiler_params=dim_sem,
        )(pos, inv_tiled)
        # Free metadata reshape on a contiguous array back to the module's shape.
        return cos.reshape(B, S, dim), sin.reshape(B, S, dim)

    # ---- general path (e.g. Phi3-mini head_dim=96) ----
    inv_full = jnp.concatenate([inv_freq, inv_freq]).reshape(1, dim)
    pos = position_ids.astype(jnp.float32).reshape(B, S, 1)

    tile_s = _pick_tile(S, sub_mult, max_tile, want_steps)
    grid = (B, S // tile_s)

    cos, sin = pl.pallas_call(
        _rope_general_kernel,
        out_shape=(jax.ShapeDtypeStruct((B, S, dim), out_dtype),
                   jax.ShapeDtypeStruct((B, S, dim), out_dtype)),
        grid=grid,
        in_specs=[
            pl.BlockSpec((1, tile_s, 1), lambda b, t: (b, t, 0)),
            pl.BlockSpec((1, dim), lambda b, t: (0, 0)),
        ],
        out_specs=(
            pl.BlockSpec((1, tile_s, dim), lambda b, t: (b, t, 0)),
            pl.BlockSpec((1, tile_s, dim), lambda b, t: (b, t, 0)),
        ),
        compiler_params=dim_sem,
    )(pos, inv_full)
    return cos, sin


# --------------------------- pure-JAX reference ------------------------------

def _reference(x, position_ids, dim, base=10000.0):
    inv_freq = 1.0 / (base ** (jnp.arange(0, dim, 2, dtype=jnp.float32) / dim))
    freqs = position_ids.astype(jnp.float32)[:, :, None] * inv_freq[None, None, :]
    emb = jnp.concatenate([freqs, freqs], axis=-1)
    return jnp.cos(emb).astype(x.dtype), jnp.sin(emb).astype(x.dtype)


# -------------------------------- main ---------------------------------------

if __name__ == "__main__":
    key = jax.random.PRNGKey(0)

    # Case 1 (spec-sized, dense path): B=2, H=4, S=8, head_dim=32, bf16 output.
    B, H, S, DIM = 2, 4, 8, 32
    x = jax.random.normal(key, (B, H, S, DIM), dtype=jnp.float32).astype(jnp.bfloat16)
    position_ids = (jnp.arange(S, dtype=jnp.int32)[None, :]
                    + jnp.array([[0], [3]], dtype=jnp.int32))            # (B, S)
    cos, sin = phi3_rotary_embedding(x, position_ids, dim=DIM)
    jax.block_until_ready((cos, sin))
    ref_cos, ref_sin = _reference(x, position_ids, DIM)
    assert cos.shape == (B, S, DIM) and sin.shape == (B, S, DIM)
    assert cos.dtype == x.dtype and sin.dtype == x.dtype
    np.testing.assert_allclose(np.asarray(cos, np.float32),
                               np.asarray(ref_cos, np.float32), atol=2e-2, rtol=2e-2)
    np.testing.assert_allclose(np.asarray(sin, np.float32),
                               np.asarray(ref_sin, np.float32), atol=2e-2, rtol=2e-2)

    # Case 2 (general path): realistic Phi3-mini head_dim=96, multi-tile, B=1.
    B2, S2, DIM2 = 1, 48, 96
    x2 = jnp.zeros((B2, 1, S2, DIM2), jnp.bfloat16)
    pos2 = jnp.arange(S2, dtype=jnp.int32)[None, :] * 3 + 7
    cos2, sin2 = phi3_rotary_embedding(x2, pos2, dim=DIM2)
    jax.block_until_ready((cos2, sin2))
    rc2, rs2 = _reference(x2, pos2, DIM2)
    np.testing.assert_allclose(np.asarray(cos2, np.float32),
                               np.asarray(rc2, np.float32), atol=2e-2, rtol=2e-2)
    np.testing.assert_allclose(np.asarray(sin2, np.float32),
                               np.asarray(rs2, np.float32), atol=2e-2, rtol=2e-2)

    # Case 3 (dense path, multi-tile, f32 output, B=1 -> >=2 grid steps).
    B3, S3, DIM3 = 1, 256, 64
    x3 = jnp.zeros((B3, 1, S3, DIM3), jnp.float32)
    pos3 = jnp.arange(S3, dtype=jnp.int32)[None, :]
    cos3, sin3 = phi3_rotary_embedding(x3, pos3, dim=DIM3)
    jax.block_until_ready((cos3, sin3))
    rc3, rs3 = _reference(x3, pos3, DIM3)
    np.testing.assert_allclose(np.asarray(cos3), np.asarray(rc3), atol=2e-3, rtol=2e-3)
    np.testing.assert_allclose(np.asarray(sin3), np.asarray(rs3), atol=2e-3, rtol=2e-3)

    print("KERNEL_OK")
</pallas_src>

<mosaic_0001>
module attributes {stable_mosaic.version = 11 : i64} {
  func.func @_rope_dense_kernel(%arg0: i32, %arg1: i32, %arg2: memref<1x2x4xf32, #tpu.memory_space<vmem>>, %arg3: memref<1x128xf32, #tpu.memory_space<vmem>>, %arg4: memref<1x2x128xbf16, #tpu.memory_space<vmem>>, %arg5: memref<1x2x128xbf16, #tpu.memory_space<vmem>>) attributes {dimension_semantics = [#tpu.dimension_semantics<parallel>, #tpu.dimension_semantics<parallel>], iteration_bounds = array<i64: 2, 1>, scalar_prefetch = 0 : i64, scratch_operands = 0 : i64, tpu.core_type = #tpu.core_type<tc>, window_params = [{transform_indices = @transform_0, window_bounds = array<i64: 1, 2, 4>}, {pipeline_mode = #tpu.pipeline_mode<synchronous>, transform_indices = @transform_1, window_bounds = array<i64: 1, 128>}, {transform_indices = @transform_2, window_bounds = array<i64: 1, 2, 128>}, {transform_indices = @transform_3, window_bounds = array<i64: 1, 2, 128>}]} {
    %c0 = arith.constant 0 : index
    %c0_0 = arith.constant 0 : index
    %c0_1 = arith.constant 0 : index
    %0 = vector.load %arg2[%c0, %c0_0, %c0_1] : memref<1x2x4xf32, #tpu.memory_space<vmem>>, vector<1x2x4xf32>
    %1 = vector.shape_cast %0 : vector<1x2x4xf32> to vector<2x4xf32>
    %c0_2 = arith.constant 0 : index
    %c0_3 = arith.constant 0 : index
    %2 = vector.load %arg3[%c0_2, %c0_3] : memref<1x128xf32, #tpu.memory_space<vmem>>, vector<1x128xf32>
    %3 = vector.extract_strided_slice %1 {offsets = [0, 0], sizes = [2, 1], strides = [1, 1]} : vector<2x4xf32> to vector<2x1xf32>
    %4 = vector.shape_cast %3 : vector<2x1xf32> to vector<2x1xf32>
    %5 = vector.broadcast %4 : vector<2x1xf32> to vector<2x128xf32>
    %6 = tpu.iota {dimensions = array<i32: 1>} : vector<2x128xi32>
    %c32_i32 = arith.constant 32 : i32
    %7 = vector.broadcast %c32_i32 : i32 to vector<2x128xi32>
    %8 = arith.cmpi sge, %6, %7 : vector<2x128xi32>
    %9 = vector.extract_strided_slice %1 {offsets = [0, 1], sizes = [2, 1], strides = [1, 1]} : vector<2x4xf32> to vector<2x1xf32>
    %10 = vector.shape_cast %9 : vector<2x1xf32> to vector<2x1xf32>
    %11 = vector.broadcast %10 : vector<2x1xf32> to vector<2x128xf32>
    %12 = arith.select %8, %11, %5 : vector<2x128xi1>, vector<2x128xf32>
    %c64_i32 = arith.constant 64 : i32
    %13 = vector.broadcast %c64_i32 : i32 to vector<2x128xi32>
    %14 = arith.cmpi sge, %6, %13 : vector<2x128xi32>
    %15 = vector.extract_strided_slice %1 {offsets = [0, 2], sizes = [2, 1], strides = [1, 1]} : vector<2x4xf32> to vector<2x1xf32>
    %16 = vector.shape_cast %15 : vector<2x1xf32> to vector<2x1xf32>
    %17 = vector.broadcast %16 : vector<2x1xf32> to vector<2x128xf32>
    %18 = arith.select %14, %17, %12 : vector<2x128xi1>, vector<2x128xf32>
    %c96_i32 = arith.constant 96 : i32
    %19 = vector.broadcast %c96_i32 : i32 to vector<2x128xi32>
    %20 = arith.cmpi sge, %6, %19 : vector<2x128xi32>
    %21 = vector.extract_strided_slice %1 {offsets = [0, 3], sizes = [2, 1], strides = [1, 1]} : vector<2x4xf32> to vector<2x1xf32>
    %22 = vector.shape_cast %21 : vector<2x1xf32> to vector<2x1xf32>
    %23 = vector.broadcast %22 : vector<2x1xf32> to vector<2x128xf32>
    %24 = arith.select %20, %23, %18 : vector<2x128xi1>, vector<2x128xf32>
    %25 = vector.broadcast %2 : vector<1x128xf32> to vector<2x128xf32>
    %26 = arith.mulf %24, %25 : vector<2x128xf32>
    %27 = math.cos %26 : vector<2x128xf32>
    %28 = arith.truncf %27 : vector<2x128xf32> to vector<2x128xbf16>
    %c0_4 = arith.constant 0 : index
    %c0_5 = arith.constant 0 : index
    %c0_6 = arith.constant 0 : index
    %29 = vector.load %arg4[%c0_4, %c0_5, %c0_6] : memref<1x2x128xbf16, #tpu.memory_space<vmem>>, vector<1x2x128xbf16>
    %30 = vector.shape_cast %29 : vector<1x2x128xbf16> to vector<2x128xbf16>
    %31 = vector.shape_cast %28 : vector<2x128xbf16> to vector<1x2x128xbf16>
    tpu.vector_store %arg4[%c0_4, %c0_5, %c0_6], %31 {strides = array<i32>} : memref<1x2x128xbf16, #tpu.memory_space<vmem>>, vector<1x2x128xbf16>,
    %32 = math.sin %26 : vector<2x128xf32>
    %33 = arith.truncf %32 : vector<2x128xf32> to vector<2x128xbf16>
    %c0_7 = arith.constant 0 : index
    %c0_8 = arith.constant 0 : index
    %c0_9 = arith.constant 0 : index
    %34 = vector.load %arg5[%c0_7, %c0_8, %c0_9] : memref<1x2x128xbf16, #tpu.memory_space<vmem>>, vector<1x2x128xbf16>
    %35 = vector.shape_cast %34 : vector<1x2x128xbf16> to vector<2x128xbf16>
    %36 = vector.shape_cast %33 : vector<2x128xbf16> to vector<1x2x128xbf16>
    tpu.vector_store %arg5[%c0_7, %c0_8, %c0_9], %36 {strides = array<i32>} : memref<1x2x128xbf16, #tpu.memory_space<vmem>>, vector<1x2x128xbf16>,
    return
  }
  func.func @transform_0(%arg0: i32, %arg1: i32) -> (i32, i32, i32) {
    %c0_i32 = arith.constant 0 : i32
    %c0_i32_0 = arith.constant 0 : i32
    return %arg0, %arg1, %c0_i32 : i32, i32, i32
  }
  func.func @transform_1(%arg0: i32, %arg1: i32) -> (i32, i32) {
    %c0_i32 = arith.constant 0 : i32
    %c0_i32_0 = arith.constant 0 : i32
    %c0_i32_1 = arith.constant 0 : i32
    return %c0_i32, %c0_i32_0 : i32, i32
  }
  func.func @transform_2(%arg0: i32, %arg1: i32) -> (i32, i32, i32) {
    %c0_i32 = arith.constant 0 : i32
    %c0_i32_0 = arith.constant 0 : i32
    return %arg0, %arg1, %c0_i32 : i32, i32, i32
  }
  func.func @transform_3(%arg0: i32, %arg1: i32) -> (i32, i32, i32) {
    %c0_i32 = arith.constant 0 : i32
    %c0_i32_0 = arith.constant 0 : i32
    return %arg0, %arg1, %c0_i32 : i32, i32, i32
  }
}

</mosaic_0001>

<bundles_post_ra>
// kernel: tpu_custom_call.1
= control target key start
LH: loop header
LB: loop body
LE: loop exit
PB: predicated region body
PF: predicated region fallthrough
CT: control target
= control target key end

     0   :  { %9 = vsyncpa [#allocation3], 0  ;;  %s1291_s0 = inlined_call_operand.hbm [shape: f32[2,2,4], index: 0, kind: input, shape index: {}]   ;;  %s1292_s1 = inlined_call_operand.hbm [shape: f32[1,128], index: 1, kind: input, shape index: {}]   ;;  %s1293_s2 = inlined_call_operand.hbm [shape: bf16[2,2,128], index: 2, kind: output, shape index: {0}]   ;;  %s1294_s3 = inlined_call_operand.hbm [shape: bf16[2,2,128], index: 3, kind: output, shape index: {1}]  }
   0x1   :  { %11 = vsyncpa [#allocation3 + $0x1], 0 }
   0x2   :  { %12 = vsyncpa [#allocation6], 0 }
   0x3   :  { %13 = vsyncpa [#allocation4], 0 }
   0x4   :  { %15 = vsyncpa [#allocation4 + $0x1], 0 }
   0x5   :  { %16 = vsyncpa [#allocation9], 0 }
   0x6   :  { %18 = vsyncpa [#allocation9 + $0x1], 0  ;;  %s1045_s12 = smov 0   ;;  %s1047_s13 = smov 0  }
   0x7   :  { %s1049_s14 = smov 0   ;;  %s1051_s15 = smov 0  }
   0x8   :  { %s1053_s16 = smov 0   ;;  %s1055_s17 = smov 0  }
   0x9 LB: > { %s722_s18 = sadd.s32 4294967295, %s1012_s17   ;;  %s723_s19 = sadd.s32 4294967294, %s1012_s17   ;;  %s1012_s17 = sphi %s1055_s17, %s24_s17   ;;  %s1008_s16 = sphi %s1053_s16, %s1306_s16   ;;  %s1004_s15 = sphi %s1051_s15, %s1305_s15   ;;  %s1000_s14 = sphi %s1049_s14, %s1304_s14   ;;  %s996_s13 = sphi %s1047_s13, %s1303_s13   ;;  %s992_s12 = sphi %s1045_s12, %s1302_s12  }
   0xa   : > { %p58_p0 = scmp.ne.s32.totalorder %s996_s13, %s992_s12  ;;  %p1079_p1 = scmp.eq.s32.totalorder %s722_s18, 0 }
   0xb   : > { %p1083_p2 = scmp.eq.s32.totalorder %s722_s18, 1  ;;  %p111_p3 = scmp.eq.s32.totalorder %s723_s19, 1 }
   0xc   : > { %p1089_p4 = por %p1079_p1, %p58_p0  ;;  %p724_p5 = scmp.ge.s32.totalorder %s1012_s17, 1 }
   0xd   : > { %p1094_p6 = por %p111_p3, %p58_p0  ;;  %p146_p7 = scmp.lt.s32.totalorder %s1012_s17, 3 }
   0xe   : > { %s158_s26 = sshll.u32 %s1292_s1, 4  ;;  %p726_p9 = scmp.ge.s32.totalorder %s1012_s17, 2  ;;  %s159_s26 = int_to_ptr.hbm [resolvable:$true] %s158_s26 }
   0xf   : > { %p1102_p8 = pnand %p724_p5, %p146_p7  ;;  %s1014_s28 = smov [#allocation5]  }
  0x10   : > { %s160_s29 = sshll.u32 %s1014_s28, 4  ;;  %s36_s30 = sadd.s32 1, %s1008_s16  ;;  %s161_s29 = int_to_ptr.vmem [resolvable:$true] %s160_s29 }
  0x11   : > { %p750_p10 = pneg %p1102_p8  ;;  %p38_p12 = scmp.ge.s32.totalorder %s36_s30, 2 }
  0x12   : > { %s45_s4 = sadd.s32 1, %s1000_s14  ;;  %p52_p13 = scmp.ne.s32.totalorder %s1000_s14, %s996_s13 }
  0x13   : > { %p751_p11 = pnand %p750_p10, %p1079_p1  ;;  %p53_p0 = scmp.eq.s32.totalorder %s1012_s17, 0 }
  0x14   : > { %s1308_s30 = smov (%p38_p12, %s36_s30), 0  ;;  %p1124_p5 = por %p1083_p2, %p52_p13 }
  0x15   : > { %753 = dma.hbm_to_vmem [thread:$0]  (!%p751_p11), %s159_s26, 16, %s161_s29, [#allocation6]  }
  0x16   : > { %p1118_p3 = por %p53_p0, %p52_p13  ;;  %s40_s7 = ssub.s32 %s1008_s16, %s1308_s30 }
  0x17   : > { %p766_p7 = scmp.lt.s32.totalorder %s1012_s17, 2  ;;  %p43_p10 = scmp.eq.s32.totalorder %s40_s7, 0 }
  0x18   : > { %s171_s8 = sand.u32 1, %s1000_s14   ;;  %s728_s11 = sshll.u32 %s1008_s16, 1 }
  0x19   : > { %s727_s9 = sshll.u32 %s171_s8, 1  ;;  %s180_s24 = scalar_lea.hbm %s1291_s0, %s728_s11 }
  0x1a   : > { %s1133_s10 = scalar_select %p43_p10, %s1000_s14, %s45_s4  }
  0x1b   : > { %s175_s25 = scalar_lea.vmem [#allocation2], %s727_s9  ;;  %s182_s21 = sshll.u32 %s180_s24, 4  ;;  %s183_s21 = int_to_ptr.hbm [resolvable:$true] %s182_s21 }
  0x1c   : > { %s184_s26 = sshll.u32 %s175_s25, 4  ;;  %p755_p2 = pnand %p766_p7, %p1118_p3  ;;  %s185_s26 = int_to_ptr.vmem [resolvable:$true] %s184_s26 }
  0x1d   : > { %s172_s28 = scalar_lea.sflag [#allocation3], %s171_s8  ;;  %193 = sbr.rel (%p1102_p8) target bundleno = 281 (0x119), region = 28 }
  0x1e   : > { %757 = dma.hbm_to_vmem [thread:$0]  (!%p755_p2), %s183_s21, 32, %s185_s26, %s172_s28  }
  0x1f   : > { %s1144_s29 = sand.u32 (!%p1102_p8), 1, %s996_s13  }
  0x20   : > { %s730_s4 = sshll.u32 (!%p1102_p8), %s1144_s29, 1  ;;  %s196_s7 = scalar_lea.sflag (!%p1102_p8), [#allocation3], %s1144_s29 }
  0x21   : > { %s199_s9 = scalar_lea.vmem (!%p1102_p8), [#allocation2], %s730_s4 }
  0x22   : > { %975 = dma.done.wait (%p1089_p4), %s196_s7, 32  }
  0x23   : > { %977 = vsyncadd (%p1089_p4), %s196_s7, 4294967264 }
  0x24   : > { %979 = dma.done.wait (%p1079_p1), [#allocation6], 16  }
  0x25   : > { %981 = vsyncadd (%p1079_p1), [#allocation6], 4294967280  ;;  %v1015_v0 = vmov 0   ;;  %v1016_v1 = vmov 2   ;;  %v231_v2 = vld [vmem:[%s199_s9] sm:$0x3]  ;;  %v238_v5 = vlaneseq  ;;  %s589_s27 = scalar_lea.hbm %s1293_s2, %s1004_s15  ;;  %s603_s11 = scalar_lea.hbm %s1294_s3, %s1004_s15 }
  0x26   : > { %828 = vset.pattern.permute.xlu0 %v1015_v0  ;;  %830 = vset.pattern.permute.xlu1 %v1016_v1  ;;  %v1017_v3 = vmov 1   ;;  %v1018_v4 = vmov 3   ;;  %v833_v10 = vld [vmem:[#allocation5] ss:$0 sm:$0xff]  ;;  %v1019_v27 = vmov 683565275  }
  0x27   : > { %235 = vperm.xlu0 %828, %v231_v2   ;;  %248 = vperm.xlu1 %830, %v231_v2   ;;  %v239_v8 = vand.u32 127, %v238_v5  ;;  %v1020_v29 = vmov 2475754826   ;;  %v1021_v32 = vmov 2131351028   ;;  %s224_s18 = scalar_lea.vmem [#allocation7], %s1144_s29 }
  0x28   : > { %v1022_v35 = vmov 2102212464   ;;  %v1023_v38 = vmov 920167782   ;;  %v1024_v41 = vmov 1326507024  }
  0x29   : > { %vm240_vm0 = vcmp.ge.s32.totalorder %v239_v8, 32  ;;  %vm246_vm1 = vcmp.ge.s32.totalorder %v239_v8, 64  ;;  %vm252_vm2 = vcmp.ge.s32.totalorder %v239_v8, 96  ;;  %s1225_s19 = sshll.u32 %s224_s18, 4  ;;  %s1227_s24 = sshll.u32 %s589_s27, 4  ;;  %s592_s19 = int_to_ptr.vmem [resolvable:$true] %s1225_s19  ;;  %s594_s24 = int_to_ptr.hbm [resolvable:$true] %s1227_s24 }
  0x2a   : > { %s230_s15 = scalar_lea.vmem [#allocation8], %s1144_s29  ;;  %s1234_s26 = sshll.u32 %s603_s11, 4  ;;  %s608_s26 = int_to_ptr.hbm [resolvable:$true] %s1234_s26 }
  0x2b   : > { %s1232_s25 = sshll.u32 %s230_s15, 4  ;;  %s576_s21 = scalar_lea.sflag [#allocation4], %s1144_s29  ;;  %s606_s25 = int_to_ptr.vmem [resolvable:$true] %s1232_s25 }
  0x2c   : > { %s908_s28 = sshra.s32 %s594_s24, 4  ;;  %s914_s20 = scalar_lea.hbm %s1293_s2, 2  ;;  %s909_s28 = int_to_ptr.hbm [resolvable:$true] %s908_s28 }
  0x2d   : > { %s910_s4 = scalar_lea.hbm %s909_s28, 1  ;;  %p915_p11 = scmp.lt.s32.totalorder %s909_s28, %s1293_s2 }
  0x2e   : > { %p911_p1 = scmp.ne.s32.totalorder %s909_s28, %s910_s4  ;;  %p916_p12 = scmp.lt.s32.totalorder %s914_s20, %s910_s4 }
  0x2f   : > { %829 = vset.pattern.permute.xlu0 %v1017_v3  ;;  %831 = vset.pattern.permute.xlu1 %v1018_v4 }
  0x30   : > { %242 = vperm.xlu0 %829, %v231_v2   ;;  %254 = vperm.xlu1 %831, %v231_v2   ;;  %p912_p4 = pnand %p911_p1, %p1124_p5  ;;  %p917_p13 = por %p916_p12, %p915_p11 }
  0x32   : > { %p913_p8 = pneg %p912_p4 }
  0x34   : > { %p918_p0 = pnand %p917_p13, %p913_p8 }
  0x38   : > { %832 = vset.pattern.permute.xlu0 %v1018_v4 }
  0x99   : > { %v236_v6 = vpop.permute.xlu0 %235  ;;  %v249_v7 = vpop.permute.xlu1 %248 }
  0xa2   : > { %v243_v9 = vpop.permute.xlu0 %242  ;;  %v255_v11 = vpop.permute.xlu1 %254 }
  0xa3   : > { %v245_v12 = vsel %vm240_vm0, %v243_v9, %v236_v6 }
  0xa4   : > { %v251_v13 = vsel %vm246_vm1, %v249_v7, %v245_v12 }
  0xa5   : > { %v257_v14 = vsel %vm252_vm2, %v255_v11, %v251_v13 }
  0xa6   : > { %v1157_v15 = vmul.f32 %v833_v10, %v257_v14 }
  0xa8   : > { %v265_v16 = vand.u32 2139095040, %v1157_v15  ;;  %v262_v19 = vand.u32 2147483647, %v1157_v15  ;;  %vm264_vm15 = vcmp.lt.s32.totalorder %v1157_v15, 0 }
  0xaa   : > { %v266_v17 = vshrl.u32 %v265_v16, 23  ;;  %v269_v21 = vand.u32 8388607, %v262_v19  ;;  %vm263_vm0 = vcmp.le.f32.partialorder %v262_v19, 0.7853982 }
  0xac   : > { %v732_v18 = vadd.s32 4294967169, %v266_v17  ;;  %v270_v25 = vor.u32 8388608, %v269_v21 }
  0xae   : > { %v272_v20 = vadd.s32 1, %v732_v18  ;;  %v1174_v48 = vshll.u32 %v270_v25, 8 }
  0xb0   : > { %vm273_vm3 = vcmp.gt.s32.totalorder %v272_v20, 0  ;;  %v311_v57 = vand.u32 65535, %v1174_v48  ;;  %v312_v58 = vshrl.u32 %v1174_v48, 16 }
  0xb1   : > { %v274_v22 = vsel %vm273_vm3, %v272_v20, 0 }
  0xb2   : > { %v276_v23 = vand.u32 31, %v274_v22  ;;  %v1165_v26 = vshrl.u32 %v274_v22, 5 }
  0xb4   : > { %v1163_v24 = vsub.s32 32, %v276_v23  ;;  %v279_v28 = vshll.u32 %v1019_v27, %v276_v23  ;;  %v282_v30 = vshll.u32 %v1020_v29, %v276_v23  ;;  %v285_v34 = vshll.u32 %v1021_v32, %v276_v23 }
  0xb5   : > { %v288_v37 = vshll.u32 %v1022_v35, %v276_v23  ;;  %v291_v40 = vshll.u32 %v1023_v38, %v276_v23  ;;  %vm294_vm4 = vcmp.lt.s32.totalorder %v1165_v26, 1  ;;  %vm297_vm5 = vcmp.lt.s32.totalorder %v1165_v26, 4 }
  0xb6   : > { %v280_v31 = vshrl.u32 %v1020_v29, %v1163_v24  ;;  %v283_v33 = vshrl.u32 %v1021_v32, %v1163_v24  ;;  %v286_v36 = vshrl.u32 %v1022_v35, %v1163_v24  ;;  %v289_v39 = vshrl.u32 %v1023_v38, %v1163_v24 }
  0xb7   : > { %v292_v42 = vshrl.u32 %v1024_v41, %v1163_v24  ;;  %vm296_vm6 = vcmp.lt.s32.totalorder %v1165_v26, 3  ;;  %vm295_vm7 = vcmp.lt.s32.totalorder %v1165_v26, 2  ;;  %v278_v22 = vshrl.u32 %v1019_v27, %v1163_v24 }
  0xb8   : > { %v281_v43 = vor.u32 %v280_v31, %v279_v28  ;;  %v284_v44 = vor.u32 %v283_v33, %v282_v30  ;;  %v287_v45 = vor.u32 %v286_v36, %v285_v34  ;;  %v290_v46 = vor.u32 %v289_v39, %v288_v37 }
  0xb9   : > { %v293_v47 = vor.u32 %v292_v42, %v291_v40 }
  0xba   : > { %v302_v49 = vsel %vm294_vm4, %v281_v43, %v284_v44  ;;  %v306_v50 = vsel %vm294_vm4, %v284_v44, %v287_v45  ;;  %v303_v51 = vsel %vm297_vm5, %v290_v46, 920167782  ;;  %v299_v18 = vsel %vm297_vm5, %v287_v45, 2102212464 }
  0xbb   : > { %v307_v52 = vsel %vm297_vm5, %v293_v47, 1326507024  ;;  %v304_v53 = vsel %vm296_vm6, %v287_v45, %v303_v51  ;;  %v298_v31 = vsel %vm294_vm4, %v278_v22, %v281_v43  ;;  %v300_v32 = vsel %vm296_vm6, %v284_v44, %v299_v18 }
  0xbc   : > { %v308_v54 = vsel %vm296_vm6, %v290_v46, %v307_v52  ;;  %v305_v55 = vsel %vm295_vm7, %v302_v49, %v304_v53  ;;  %v301_v24 = vsel %vm295_vm7, %v298_v31, %v300_v32 }
  0xbd   : > { %v309_v56 = vsel %vm295_vm7, %v306_v50, %v308_v54  ;;  %v335_v61 = vand.u32 65535, %v305_v55  ;;  %v336_v62 = vshrl.u32 %v305_v55, 16  ;;  %v355_v39 = vmul.u32 %v1174_v48, %v301_v24 }
  0xbe   : > { %v313_v59 = vand.u32 65535, %v309_v56  ;;  %v314_v60 = vshrl.u32 %v309_v56, 16  ;;  %vm405_vm7 = vweird.f32 %v1157_v15 }
  0xbf   : > { %v338_v2 = vmul.u32 %v336_v62, %v311_v57  ;;  %v339_v3 = vmul.u32 %v335_v61, %v312_v58  ;;  %v337_v7 = vmul.u32 %v335_v61, %v311_v57  ;;  %v340_v11 = vmul.u32 %v336_v62, %v312_v58 }
  0xc0   : > { %v316_v63 = vmul.u32 %v314_v60, %v311_v57  ;;  %v317_v1 = vmul.u32 %v313_v59, %v312_v58  ;;  %v315_v4 = vmul.u32 %v313_v59, %v311_v57  ;;  %v318_v6 = vmul.u32 %v314_v60, %v312_v58 }
  0xc1   : > { %v341_v8 = vshll.u32 %v338_v2, 16  ;;  %v343_v13 = vshll.u32 %v339_v3, 16  ;;  %v342_v29 = vshrl.u32 %v338_v2, 16  ;;  %v344_v35 = vshrl.u32 %v339_v3, 16 }
  0xc2   : > { %v319_v5 = vshll.u32 %v316_v63, 16  ;;  %v321_v9 = vshll.u32 %v317_v1, 16  ;;  %v320_v23 = vshrl.u32 %v316_v63, 16  ;;  %v322_v33 = vshrl.u32 %v317_v1, 16 }
  0xc3   : > { %vm345_vm9 = vc.u32 %v337_v7, %v341_v8  ;;  %v347_v14 = vadd.s32 %v341_v8, %v337_v7 }
  0xc4   : > { %vm323_vm8 = vc.u32 %v315_v4, %v319_v5  ;;  %v325_v10 = vadd.s32 %v319_v5, %v315_v4  ;;  %v346_v17 = vsel %vm345_vm9, 1, %v1015_v0 }
  0xc5   : > { %v324_v12 = vsel %vm323_vm8, 1, %v1015_v0  ;;  %v348_v21 = vadd.s32 %v346_v17, %v340_v11  ;;  %vm349_vm11 = vc.u32 %v347_v14, %v343_v13  ;;  %v351_v38 = vadd.s32 %v347_v14, %v343_v13 }
  0xc6   : > { %v326_v16 = vadd.s32 %v324_v12, %v318_v6  ;;  %vm327_vm10 = vc.u32 %v325_v10, %v321_v9  ;;  %v350_v28 = vsel %vm349_vm11, 1, %v1015_v0 }
  0xc7   : > { %v328_v20 = vsel %vm327_vm10, 1, %v1015_v0  ;;  %v352_v30 = vadd.s32 %v350_v28, %v348_v21 }
  0xc8   : > { %v330_v25 = vadd.s32 %v328_v20, %v326_v16 }
  0xc9   : > { %v353_v36 = vadd.s32 %v352_v30, %v342_v29 }
  0xca   : > { %v331_v34 = vadd.s32 %v330_v25, %v320_v23 }
  0xcb   : > { %v354_v27 = vadd.s32 %v353_v36, %v344_v35 }
  0xcc   : > { %v332_v37 = vadd.s32 %v331_v34, %v322_v33 }
  0xcd   : > { %v358_v0 = vadd.s32 1, %v354_v27 }
  0xce   : > { %vm357_vm12 = vc.u32 %v332_v37, %v351_v38  ;;  %v356_v26 = vadd.s32 %v351_v38, %v332_v37 }
  0xcf   : > { %v359_v40 = vsel %vm357_vm12, %v358_v0, %v354_v27 }
  0xd0   : > { %v360_v41 = vadd.s32 %v359_v40, %v355_v39 }
  0xd2   : > { %v361_v42 = vadd.s32 536870912, %v360_v41 }
  0xd4   : > { %v362_v43 = vshrl.u32 %v361_v42, 30 }
  0xd6   : > { %v363_v45 = vshll.u32 %v362_v43, 30  ;;  %v386_v1 = vsub.s32 4, %v362_v43 }
  0xd8   : > { %v364_v44 = vsub.s32 %v360_v41, %v363_v45  ;;  %v387_v6 = vsel %vm264_vm15, %v386_v1, %v362_v43 }
  0xd9   : > { %v389_v9 = vsel %vm263_vm0, 0, %v387_v6 }
  0xda   : > { %vm365_vm13 = vcmp.lt.s32.totalorder %v364_v44, 0  ;;  %v366_v46 = vsub.s32 0, %v364_v44  ;;  %v562_v14 = vadd.s32 3, %v389_v9  ;;  %v406_v20 = vand.u32 3, %v389_v9 }
  0xdc   : > { %v367_v47 = vsel %vm365_vm13, %v366_v46, %v364_v44  ;;  %v563_v21 = vand.u32 3, %v562_v14  ;;  %vm407_vm1 = vcmp.lt.s32.totalorder %v406_v20, 2  ;;  %vm408_vm2 = vcmp.eq.s32.totalorder %v406_v20, 0 }
  0xdd   : > { %v368_v49 = vclz %v367_v47  ;;  %vm411_vm3 = vcmp.eq.s32.totalorder %v406_v20, 2 }
  0xde   : > { %vm564_vm4 = vcmp.lt.s32.totalorder %v563_v21, 2  ;;  %vm565_vm5 = vcmp.eq.s32.totalorder %v563_v21, 0  ;;  %vm568_vm6 = vcmp.eq.s32.totalorder %v563_v21, 2 }
  0xdf   : > { %v733_v50 = vadd.s32 4294967294, %v368_v49 }
  0xe1   : > { %vm734_vm14 = vcmp.lt.s32.totalorder %v733_v50, 0 }
  0xe2   : > { %v371_v51 = vsel %vm734_vm14, 0, %v733_v50 }
  0xe3   : > { %v372_v52 = vsub.s32 32, %v371_v51  ;;  %v376_v53 = vsub.s32 4294967266, %v371_v51  ;;  %v373_v54 = vshll.u32 %v364_v44, %v371_v51 }
  0xe5   : > { %v374_v55 = vshrl.u32 %v356_v26, %v372_v52  ;;  %v377_v56 = vadd.s32 127, %v376_v53 }
  0xe7   : > { %v375_v48 = vor.u32 %v374_v55, %v373_v54  ;;  %v378_v57 = vshll.u32 %v377_v56, 23 }
  0xe9   : > { %v379_v58 = vor.u32 4788187, %v378_v57  ;;  %v382_v60 = vcvt.s32.f32 %v375_v48 }
  0xeb   : > { %v380_v59 = vand.u32 2147483647, %v379_v58 }
  0xed   : > { %v383_v61 = vmul.f32 %v382_v60, %v380_v59 }
  0xef   : > { %v384_v62 = vxor.u32 2147483648, %v383_v61 }
  0xf1   : > { %v385_v63 = vsel %vm264_vm15, %v384_v62, %v383_v61 }
  0xf2   : > { %v388_v2 = vsel %vm263_vm0, %v1157_v15, %v385_v63 }
  0xf3   : > { %v390_v3 = vmul.f32 %v388_v2, %v388_v2 }
  0xf5   : > { %v398_v4 = vmul.f32 -0.00019511016, %v390_v3  ;;  %v391_v5 = vmul.f32 -0.001358992, %v390_v3 }
  0xf7   : > { %v399_v7 = vadd.f32 0.008332121, %v398_v4  ;;  %v392_v8 = vadd.f32 0.041655596, %v391_v5 }
  0xf9   : > { %v400_v10 = vmul.f32 %v399_v7, %v390_v3  ;;  %v393_v11 = vmul.f32 %v392_v8, %v390_v3 }
  0xfb   : > { %v401_v12 = vadd.f32 -0.16666654, %v400_v10  ;;  %v394_v13 = vadd.f32 -0.4999988, %v393_v11 }
  0xfd   : > { %v402_v19 = vmul.f32 %v401_v12, %v390_v3  ;;  %v395_v16 = vmul.f32 %v394_v13, %v390_v3 }
  0xff   : > { %v403_v17 = vadd.f32 1.0, %v402_v19  ;;  %v396_v18 = vadd.f32 1.0, %v395_v16 }
 0x101   : > { %v404_v22 = vmul.f32 %v403_v17, %v388_v2  ;;  %v412_v23 = vxor.u32 2147483648, %v396_v18 }
 0x103   : > { %v409_v25 = vxor.u32 2147483648, %v404_v22  ;;  %v413_v29 = vsel %vm411_vm3, %v412_v23, %v404_v22  ;;  %v570_v31 = vsel %vm568_vm6, %v412_v23, %v404_v22 }
 0x105   : > { %v410_v28 = vsel %vm408_vm2, %v396_v18, %v409_v25  ;;  %v567_v30 = vsel %vm565_vm5, %v396_v18, %v409_v25 }
 0x106   : > { %v414_v32 = vsel %vm407_vm1, %v410_v28, %v413_v29  ;;  %v571_v33 = vsel %vm564_vm4, %v567_v30, %v570_v31 }
 0x107   : > { %v415_v34 = vsel %vm405_vm7, nan, %v414_v32  ;;  %v572_v35 = vsel %vm405_vm7, nan, %v571_v33 }
 0x108   : > { %v416_v36 = vpack.c.bf16 %v415_v34, %v415_v34  ;;  %v573_v37 = vpack.c.bf16 %v572_v35, %v572_v35 }
 0x10a   : > { %417 = vst [vmem:[%s224_s18] sm:$0x1] %v416_v36 }
 0x10b   : > { %921 = shalt.err (!%p918_p0)
}
 0x10c   : > { %746 = dma.vmem_to_hbm [thread:$0]  (%p1124_p5), %s592_s19, 16, %s594_s24, %s576_s21   ;;  %574 = vst [vmem:[%s230_s15] sm:$0x1] %v573_v37 }
 0x10d   : > { %s580_s5 = scalar_lea.sflag [#allocation9], %s1144_s29  ;;  %s936_s8 = sshra.s32 %s608_s26, 4  ;;  %s937_s8 = int_to_ptr.hbm [resolvable:$true] %s936_s8 }
 0x10e   : > { %s938_s11 = scalar_lea.hbm %s937_s8, 1  ;;  %s942_s4 = scalar_lea.hbm %s1294_s3, 2 }
 0x10f   : > { %p939_p3 = scmp.ne.s32.totalorder %s937_s8, %s938_s11  ;;  %p943_p2 = scmp.lt.s32.totalorder %s937_s8, %s1294_s3 }
 0x110   : > { %p944_p1 = scmp.lt.s32.totalorder %s942_s4, %s938_s11 }
 0x111   : > { %p940_p7 = pnand %p939_p3, %p1124_p5 }
 0x112   : > { %p945_p4 = por %p944_p1, %p943_p2 }
 0x113   : > { %p941_p10 = pneg %p940_p7 }
 0x115   : > { %p946_p8 = pnand %p945_p4, %p941_p10 }
 0x117   : > { %949 = shalt.err (!%p946_p8)
}
 0x118   : > { %747 = dma.vmem_to_hbm [thread:$0]  (%p1124_p5), %s606_s25, 16, %s608_s26, %s580_s5  }
 0x119 PF: > { %s619_s29 = sand.u32 1, %s992_s12   ;;  %p759_p11 = pnand %p726_p9, %p1094_p6 }
 0x11a   : > { %s620_s19 = scalar_lea.sflag [#allocation4], %s619_s29 }
 0x11b   : > { %p760_p12 = pneg %p759_p11 }
 0x11d   : > { %983 = dma.done.wait (%p760_p12), %s620_s19, 16  }
 0x11e   : > { %985 = vsyncadd (%p760_p12), %s620_s19, 4294967280  ;;  %s629_s24 = scalar_lea.sflag [#allocation9], %s619_s29 }
 0x11f   : > { %987 = dma.done.wait (%p760_p12), %s629_s24, 16  }
 0x120   : > { %989 = vsyncadd (%p760_p12), %s629_s24, 4294967280  ;;  %s24_s17 = sadd.s32 1, %s1012_s17   ;;  %s1302_s12 = smov %s996_s13 }
 0x121   : > { %p21_p13 = scmp.ge.s32.totalorder %s24_s17, 4   ;;  %s1303_s13 = smov %s1000_s14 }
 0x122   : > { %s1304_s14 = smov %s1133_s10  ;;  %s1305_s15 = smov %s1008_s16 }
 0x123   : > { %s1306_s16 = smov %s1308_s30  ;;  %23 = sbr.rel (!%p21_p13) target bundleno = 9 (0x9), region = 94 }
 0x128   :  { %634 = vsyncpa [#allocation3], 1 }
 0x129   :  { %636 = vsyncpa [#allocation3 + $0x1], 1 }
 0x12a   :  { %637 = vsyncpa [#allocation6], 1 }
 0x12b   :  { %638 = vsyncpa [#allocation4], 1 }
 0x12c   :  { %640 = vsyncpa [#allocation4 + $0x1], 1 }
 0x12d   :  { %641 = vsyncpa [#allocation9], 1 }
 0x12e   :  { %643 = vsyncpa [#allocation9 + $0x1], 1 }

</bundles_post_ra>
